<compile_context>
chip_gen: v5e
topology: v5e:2x2
jax: 0.10.0
libtpu: 0.0.40
codegen_flags: <defaults>
</compile_context>

<pallas_src>
import functools

import jax
import jax.numpy as jnp
from jax.experimental import pallas as pl
from jax.experimental.pallas import tpu as pltpu

_LANES = 512                               # lane-dense fallback row width (multiple of 128)
_TARGET_TILE_BYTES = 2 * 1024 * 1024       # ~2 MiB per pipeline buffer
_MIN_TILE_BYTES = 1 * 1024 * 1024
_WORKING_SET_CAP = 26 * 1024 * 1024        # (N_in + 1 out) x 2 double-buffers must fit this
_VMEM_LIMIT_CAP = 48 * 1024 * 1024         # below v7x's 64 MiB physical VMEM
_MIN_SPLIT_BYTES = 2 * 1024 * 1024         # below this, a single block (grid=1) is fine
_MAX_INPUTS_PER_CALL = 8                   # chunk longer lists to keep tiles large
_SMALL_FALLBACK_ELEMS = 1 << 15            # below this, fused XLA add beats kernel launch


def _round_up(x, m):
    return ((x + m - 1) // m) * m


def _caddtable_kernel(*refs):
    """refs = (*in_refs, out_ref). Incremental elementwise accumulate on the VPU."""
    in_refs, out_ref = refs[:-1], refs[-1]
    acc = in_refs[0][...]
    for r in in_refs[1:]:          # short unrolled loop; loads interleave with adds
        acc = acc + r[...]
    out_ref[...] = acc


def caddtable(xs, *, use_pallas=None):
    """Elementwise sum of a list/tuple of equally-shaped arrays (CAddTable.forward)."""
    xs = list(xs)
    assert len(xs) >= 1
    shape = xs[0].shape
    dtype = xs[0].dtype
    for x in xs:
        assert x.shape == shape and x.dtype == dtype, "CAddTable inputs must match"

    if len(xs) == 1:
        return xs[0]

    total = 1
    for d in shape:
        total *= int(d)

    if use_pallas is None:
        use_pallas = total >= _SMALL_FALLBACK_ELEMS
    if not use_pallas:
        return functools.reduce(jnp.add, xs)

    # Chunk very long input lists so (N+1) x 2 pipeline buffers never squeeze the
    # per-buffer tile onto the steep part of the tile-size curve.
    if len(xs) > _MAX_INPUTS_PER_CALL:
        partials = [caddtable(xs[i:i + _MAX_INPUTS_PER_CALL], use_pallas=True)
                    for i in range(0, len(xs), _MAX_INPUTS_PER_CALL)]
        return caddtable(partials, use_pallas=True)

    n_in = len(xs)
    itemsize = jnp.dtype(dtype).itemsize
    sub_mult = max(8, 32 // itemsize)       # 8 rows f32, 16 bf16/fp16, 32 int8/fp8

    # Per-buffer byte budget: ~2 MiB target, keeping the whole double-buffered
    # working set (N inputs + 1 output) x 2 under the cap.
    per_buf = min(_TARGET_TILE_BYTES,
                  max(_MIN_TILE_BYTES, _WORKING_SET_CAP // ((n_in + 1) * 2)))

    # ---- Choose a lane-dense 2-D view (rows, cols). ---------------------------
    if shape and shape[-1] % 128 == 0 and sub_mult * shape[-1] * itemsize <= per_buf:
        # Fast path: trailing dim already lane-aligned -> collapse leading dims
        # only (no pad; usually no physical relayout in the wrapper).
        cols = int(shape[-1])
        rows = total // cols
        pad = 0
    else:
        # Generic path: flatten + pad to the next multiple of 512 lanes
        # (<= 511 elements). The flatten itself may relayout, which is
        # unavoidable for arbitrary ND shapes.
        cols = _LANES
        padded_total = _round_up(total, cols)
        rows = padded_total // cols
        pad = padded_total - total

    bytes_per_row = cols * itemsize
    tile_r_budget = max(sub_mult, (per_buf // bytes_per_row) // sub_mult * sub_mult)
    view_bytes = rows * bytes_per_row

    if rows <= sub_mult or (rows <= tile_r_budget and view_bytes < _MIN_SPLIT_BYTES):
        # Small array: one full-extent block (legal even when rows % sub_mult != 0).
        tile_r = rows
    else:
        # >= 2 row-blocks (even when possible) so both v7x TensorCores get work;
        # ragged last block is handled by Pallas (OOB writes dropped).
        nblk = max(2, pl.cdiv(rows, tile_r_budget))
        if nblk % 2:
            nblk += 1
        tile_r = min(tile_r_budget, _round_up(pl.cdiv(rows, nblk), sub_mult))
        tile_r = max(sub_mult, tile_r)
    grid_sz = pl.cdiv(rows, tile_r)

    def to_2d(x):
        if pad == 0:
            return x.reshape(rows, cols)
        flat = x.reshape(-1)
        return jnp.pad(flat, (0, pad)).reshape(rows, cols)

    xs2d = [to_2d(x) for x in xs]

    spec = pl.BlockSpec((tile_r, cols), lambda i: (i, 0))
    working_set = (n_in + 1) * 2 * tile_r * cols * itemsize
    vmem_limit = int(min(_VMEM_LIMIT_CAP,
                         max(16 * 1024 * 1024, working_set + 8 * 1024 * 1024)))

    out2d = pl.pallas_call(
        _caddtable_kernel,
        out_shape=jax.ShapeDtypeStruct((rows, cols), dtype),
        grid=(grid_sz,),
        in_specs=[spec] * n_in,
        out_specs=spec,
        compiler_params=pltpu.CompilerParams(
            dimension_semantics=("parallel",),
            vmem_limit_bytes=vmem_limit),
        cost_estimate=pl.CostEstimate(
            flops=(n_in - 1) * rows * cols,
            transcendentals=0,
            bytes_accessed=(n_in + 1) * rows * cols * itemsize),
    )(*xs2d)

    if pad:
        return out2d.reshape(-1)[:total].reshape(shape)
    return out2d.reshape(shape)


if __name__ == "__main__":
    key = jax.random.PRNGKey(0)

    # Test 1: canonical NCHW residual-add style inputs (3 tensors), small last dim.
    k1, k2, k3 = jax.random.split(key, 3)
    shape = (2, 4, 16, 16)
    x1 = jax.random.normal(k1, shape, dtype=jnp.float32)
    x2 = jax.random.normal(k2, shape, dtype=jnp.float32)
    x3 = jax.random.normal(k3, shape, dtype=jnp.float32)
    out = caddtable([x1, x2, x3], use_pallas=True)       # force the kernel path
    jax.block_until_ready(out)
    ref = x1 + x2 + x3
    assert out.shape == shape
    assert jnp.allclose(out, ref, atol=1e-5, rtol=1e-5), "mismatch (3 inputs)"

    # Test 2: ragged total (exercises lane padding + output un-pad) with 4 inputs.
    shape2 = (3, 5, 7, 9)
    ys = [jax.random.normal(k, shape2, dtype=jnp.float32)
          for k in jax.random.split(jax.random.PRNGKey(1), 4)]
    out2 = caddtable(ys, use_pallas=True)
    jax.block_until_ready(out2)
    ref2 = ys[0] + ys[1] + ys[2] + ys[3]
    assert out2.shape == shape2
    assert jnp.allclose(out2, ref2, atol=1e-5, rtol=1e-5), "mismatch (4 inputs)"

    # Test 3: bf16 with lane-aligned trailing dim (no-pad fast path, 16-row granularity).
    shape3 = (8, 16, 256)
    zs = [jax.random.normal(k, shape3, dtype=jnp.bfloat16)
          for k in jax.random.split(jax.random.PRNGKey(2), 3)]
    out3 = caddtable(zs, use_pallas=True)
    jax.block_until_ready(out3)
    ref3 = (zs[0] + zs[1]) + zs[2]
    assert out3.shape == shape3 and out3.dtype == jnp.bfloat16
    assert jnp.allclose(out3.astype(jnp.float32), ref3.astype(jnp.float32),
                        atol=3e-2, rtol=3e-2), "mismatch (bf16 inputs)"

    # Test 4: large enough to take the multi-block ("parallel" grid >= 2) path.
    shape4 = (512, 1024)
    ws = [jax.random.normal(k, shape4, dtype=jnp.float32)
          for k in jax.random.split(jax.random.PRNGKey(3), 2)]
    out4 = caddtable(ws)                                  # auto Pallas path
    jax.block_until_ready(out4)
    ref4 = ws[0] + ws[1]
    assert jnp.allclose(out4, ref4, atol=1e-5, rtol=1e-5), "mismatch (multi-block)"

    print("KERNEL_OK")
</pallas_src>

<mosaic_0001>
module attributes {stable_mosaic.version = 11 : i64} {
  func.func @_caddtable_kernel(%arg0: i32, %arg1: memref<4x512xf32, #tpu.memory_space<vmem>>, %arg2: memref<4x512xf32, #tpu.memory_space<vmem>>, %arg3: memref<4x512xf32, #tpu.memory_space<vmem>>, %arg4: memref<4x512xf32, #tpu.memory_space<vmem>>) attributes {dimension_semantics = [#tpu.dimension_semantics<parallel>], iteration_bounds = array<i64: 1>, scalar_prefetch = 0 : i64, scratch_operands = 0 : i64, tpu.core_type = #tpu.core_type<tc>, window_params = [{transform_indices = @transform_0, window_bounds = array<i64: 4, 512>}, {transform_indices = @transform_1, window_bounds = array<i64: 4, 512>}, {transform_indices = @transform_2, window_bounds = array<i64: 4, 512>}, {transform_indices = @transform_3, window_bounds = array<i64: 4, 512>}]} {
    %c0 = arith.constant 0 : index
    %c0_0 = arith.constant 0 : index
    %0 = vector.load %arg1[%c0, %c0_0] : memref<4x512xf32, #tpu.memory_space<vmem>>, vector<4x512xf32>
    %c0_1 = arith.constant 0 : index
    %c0_2 = arith.constant 0 : index
    %1 = vector.load %arg2[%c0_1, %c0_2] : memref<4x512xf32, #tpu.memory_space<vmem>>, vector<4x512xf32>
    %2 = arith.addf %0, %1 : vector<4x512xf32>
    %c0_3 = arith.constant 0 : index
    %c0_4 = arith.constant 0 : index
    %3 = vector.load %arg3[%c0_3, %c0_4] : memref<4x512xf32, #tpu.memory_space<vmem>>, vector<4x512xf32>
    %4 = arith.addf %2, %3 : vector<4x512xf32>
    %c0_5 = arith.constant 0 : index
    %c0_6 = arith.constant 0 : index
    %5 = vector.load %arg4[%c0_5, %c0_6] : memref<4x512xf32, #tpu.memory_space<vmem>>, vector<4x512xf32>
    tpu.vector_store %arg4[%c0_5, %c0_6], %4 {strides = array<i32>} : memref<4x512xf32, #tpu.memory_space<vmem>>, vector<4x512xf32>,
    return
  }
  func.func @transform_0(%arg0: i32) -> (i32, i32) {
    %c0_i32 = arith.constant 0 : i32
    %c0_i32_0 = arith.constant 0 : i32
    return %arg0, %c0_i32 : i32, i32
  }
  func.func @transform_1(%arg0: i32) -> (i32, i32) {
    %c0_i32 = arith.constant 0 : i32
    %c0_i32_0 = arith.constant 0 : i32
    return %arg0, %c0_i32 : i32, i32
  }
  func.func @transform_2(%arg0: i32) -> (i32, i32) {
    %c0_i32 = arith.constant 0 : i32
    %c0_i32_0 = arith.constant 0 : i32
    return %arg0, %c0_i32 : i32, i32
  }
  func.func @transform_3(%arg0: i32) -> (i32, i32) {
    %c0_i32 = arith.constant 0 : i32
    %c0_i32_0 = arith.constant 0 : i32
    return %arg0, %c0_i32 : i32, i32
  }
}

</mosaic_0001>

<bundles_post_ra>
// kernel: tpu_custom_call.1
= control target key start
LH: loop header
LB: loop body
LE: loop exit
PB: predicated region body
PF: predicated region fallthrough
CT: control target
= control target key end

     0   :  { %8 = vsyncpa [#allocation3], 0  ;;  %s228_s0 = inlined_call_operand.hbm [shape: f32[4,512], index: 0, kind: input, shape index: {}]   ;;  %s229_s1 = inlined_call_operand.hbm [shape: f32[4,512], index: 1, kind: input, shape index: {}]   ;;  %s230_s2 = inlined_call_operand.hbm [shape: f32[4,512], index: 2, kind: input, shape index: {}]   ;;  %s231_s3 = inlined_call_operand.hbm [shape: f32[4,512], index: 3, kind: output, shape index: {}]  }
   0x1   :  { %9 = vsyncpa [#allocation6], 0  ;;  %s27_s14 = sshll.u32 %s229_s1, 4  ;;  %s28_s14 = int_to_ptr.hbm [resolvable:$true] %s27_s14 }
   0x2   :  { %10 = vsyncpa [#allocation4], 0  ;;  %s192_s15 = smov [#allocation5]   ;;  %s16_s19 = sshll.u32 %s228_s0, 4  ;;  %s17_s19 = int_to_ptr.hbm [resolvable:$true] %s16_s19 }
   0x3   :  { %s29_s16 = sshll.u32 %s192_s15, 4  ;;  %s193_s20 = smov [#allocation2]   ;;  %s30_s16 = int_to_ptr.vmem [resolvable:$true] %s29_s16 }
   0x4   :  { %32 = dma.hbm_to_vmem [thread:$0]  %s28_s14, 256, %s30_s16, [#allocation6]  }
   0x5   :  { %s18_s21 = sshll.u32 %s193_s20, 4  ;;  %s38_s24 = sshll.u32 %s230_s2, 4  ;;  %s19_s21 = int_to_ptr.vmem [resolvable:$true] %s18_s21  ;;  %s39_s24 = int_to_ptr.hbm [resolvable:$true] %s38_s24 }
   0x6   :  { %21 = dma.hbm_to_vmem [thread:$0]  %s17_s19, 256, %s19_s21, [#allocation3]  }
   0x7   :  { %s194_s1 = smov [#allocation7]  }
   0x8   :  { %s40_s25 = sshll.u32 %s194_s1, 4  ;;  %s41_s25 = int_to_ptr.vmem [resolvable:$true] %s40_s25 }
   0x9   :  { %43 = dma.hbm_to_vmem [thread:$0]  %s39_s24, 256, %s41_s25, [#allocation6]  }
   0xa   :  { %186 = dma.done.wait [#allocation3], 256  }
   0xb   :  { %187 = vsyncadd [#allocation3], 4294967040 }
   0xc   :  { %188 = dma.done.wait [#allocation6], 512  }
   0xd   :  { %189 = vsyncadd [#allocation6], 4294966784  ;;  %v56_v0 = vld [vmem:[#allocation2] sm:$0xff]  ;;  %v58_v1 = vld [vmem:[#allocation5] sm:$0xff]  ;;  %s195_s0 = smov [#allocation8]   ;;  %s75_s28 = sshll.u32 %s231_s3, 4  ;;  %s76_s28 = int_to_ptr.hbm [resolvable:$true] %s75_s28 }
   0xe   :  { %v62_v2 = vld [vmem:[#allocation7] sm:$0xff]  ;;  %v60_v3 = vadd.f32 %v58_v1, %v56_v0  ;;  %v57_v4 = vld [vmem:[#allocation2 + $0x8] sm:$0xff]  ;;  %v59_v5 = vld [vmem:[#allocation5 + $0x8] sm:$0xff]  ;;  %s73_s2 = sshll.u32 %s195_s0, 4  ;;  %s74_s2 = int_to_ptr.vmem [resolvable:$true] %s73_s2 }
   0xf   :  { %v63_v6 = vld [vmem:[#allocation7 + $0x8] sm:$0xff]  ;;  %v61_v7 = vadd.f32 %v59_v5, %v57_v4 }
  0x10   :  { %v64_v8 = vadd.f32 %v62_v2, %v60_v3 }
  0x11   :  { %v65_v9 = vadd.f32 %v63_v6, %v61_v7 }
  0x12   :  { %66 = vst [vmem:[#allocation8] sm:$0xff] %v64_v8 }
  0x13   :  { %67 = vst [vmem:[#allocation8 + $0x8] sm:$0xff] %v65_v9 }
  0x14   :  { %78 = dma.vmem_to_hbm [thread:$0]  %s74_s2, 256, %s76_s28, [#allocation4]  }
  0x15   :  { %190 = dma.done.wait [#allocation4], 256  }
  0x16   :  { %191 = vsyncadd [#allocation4], 4294967040 }
  0x17   :  { %83 = vsyncpa [#allocation3], 1 }
  0x18   :  { %84 = vsyncpa [#allocation6], 1 }
  0x19   :  { %85 = vsyncpa [#allocation4], 1 }

</bundles_post_ra>
